<compile_context>
chip_gen: v7x
topology: tpu7x:2x2x1
jax: 0.10.0
libtpu: 0.0.40
codegen_flags: <defaults>
</compile_context>

<pallas_src>
import functools

import jax
import jax.numpy as jnp
from jax import lax
from jax.experimental import pallas as pl
from jax.experimental.pallas import tpu as pltpu

MAX_INF = 99999999.0
_LANES = 128
_SUBLANES = 8
_ROW_ALIGN = 16                    # bf16 packs 2 rows/sublane -> 16-aligned tiles
_NEG_FILL = -1.0e30                # "not a positive" fill for the max reduction
_POS_FILL = MAX_INF * MAX_INF      # "not a negative" fill; sqrt() ~= MAX_INF


def _round_up(x, m):
    return ((x + m - 1) // m) * m


def _triplet_loss_kernel(q_labels_ref, q_norms_ref, feats_ref, all_labels_ref,
                         all_norms_ref, partial_ref, *, margin, n_valid):
    # q_labels_ref:   (TILE, 1)       i32   query labels (tiled)
    # q_norms_ref:    (TILE, 1)       f32   query squared norms (tiled)
    # feats_ref:      (N_pad, D_pad)  bf16  full feature matrix (resident)
    # all_labels_ref: (1, N_pad)      i32   labels, lane-major (resident)
    # all_norms_ref:  (1, N_pad)      f32   squared norms, lane-major (resident)
    # partial_ref:    (1, 8, 128)     f32   per-tile partial loss sum (broadcast)
    tile = q_labels_ref.shape[0]
    n_pad = feats_ref.shape[0]

    row0 = pl.multiple_of(pl.program_id(0) * tile, _ROW_ALIGN)
    xq = feats_ref[pl.ds(row0, tile), :]          # (TILE, D_pad) bf16
    xa = feats_ref[...]                           # (N_pad, D_pad) bf16

    # gram = xq @ xa.T without materializing a transpose: contract the feature
    # (last) axis of BOTH operands.  bf16 operands, f32 accumulation.
    gram = lax.dot_general(
        xq, xa,
        dimension_numbers=(((1,), (1,)), ((), ())),
        preferred_element_type=jnp.float32)       # (TILE, N_pad) f32

    # dist2_ij = sq_q_i + (sq_a_j - 2*gram_ij).  sq_q_i is constant along the
    # reduction axis, so it is added AFTER the max/min (saves a full-tile add).
    m = all_norms_ref[...] - 2.0 * gram           # (TILE, N_pad) f32

    lq = q_labels_ref[...]                        # (TILE, 1) i32
    la = all_labels_ref[...]                      # (1, N_pad) i32
    is_pos = lq == la                             # (TILE, N_pad) bool
    col_valid = lax.broadcasted_iota(jnp.int32, (1, n_pad), 1) < n_valid
    pos_sel = jnp.logical_and(is_pos, col_valid)
    neg_sel = jnp.logical_and(jnp.logical_not(is_pos), col_valid)

    # Hardest positive / hardest negative on SQUARED distances (sqrt and the
    # 1e-12 clamp are monotone, so they commute with max/min); sqrt is applied
    # only to the two (TILE, 1) reduced results.
    ap = jnp.max(jnp.where(pos_sel, m, _NEG_FILL), axis=1, keepdims=True)
    an = jnp.min(jnp.where(neg_sel, m, _POS_FILL), axis=1, keepdims=True)

    sq_q = q_norms_ref[...]                       # (TILE, 1) f32
    dist_ap = jnp.sqrt(jnp.maximum(sq_q + ap, 1e-12))
    # Rows with no valid negative get sqrt(~MAX_INF**2) ~= MAX_INF -> loss 0,
    # matching the reference semantics.
    dist_an = jnp.sqrt(jnp.maximum(sq_q + an, 1e-12))

    # margin_ranking_loss with y = 1: relu(dist_ap - dist_an + margin)
    per_row = jnp.maximum(dist_ap - dist_an + margin, 0.0)      # (TILE, 1)

    # Mask padded query rows before the per-tile partial sum.
    row_ids = row0 + lax.broadcasted_iota(jnp.int32, (tile, 1), 0)
    per_row = jnp.where(row_ids < n_valid, per_row, 0.0)

    partial = jnp.sum(per_row, axis=0, keepdims=True)           # (1, 1)
    partial_ref[...] = jnp.broadcast_to(
        partial.reshape(1, 1, 1), (1, _SUBLANES, _LANES))


def triplet_loss_pallas(feats, labels, margin=0.3, tile_rows=256):
    """feats: (N, D) float, labels: (N,) int -> scalar float32 triplet loss."""
    feats = feats.astype(jnp.float32)
    labels = labels.astype(jnp.int32)
    N, D = feats.shape

    d_pad = _round_up(max(D, 1), _LANES)
    tile = min(_round_up(tile_rows, _ROW_ALIGN), _round_up(N, _ROW_ALIGN))
    n_pad = _round_up(N, tile)          # tile evenly divides the padded batch
    grid = n_pad // tile

    feats_p = jnp.pad(feats, ((0, n_pad - N), (0, d_pad - D)))
    feats_bf = feats_p.astype(jnp.bfloat16)       # bf16 MXU operands
    # Squared norms from the bf16-rounded features (f32 accumulation) so the
    # distance-matrix diagonal stays ~0 even with the bf16 gram.
    fb32 = feats_bf.astype(jnp.float32)
    sq = jnp.sum(fb32 * fb32, axis=1)             # (n_pad,) f32

    labels_p = jnp.pad(labels, (0, n_pad - N), constant_values=-1)
    labels_col = labels_p.reshape(n_pad, 1)
    labels_row = labels_p.reshape(1, n_pad)
    norms_col = sq.reshape(n_pad, 1)
    norms_row = sq.reshape(1, n_pad)

    # Scoped VMEM: resident bf16 feats (x2 buffering) + (tile, n_pad) f32
    # intermediates + aux, with headroom; never below a safe floor.
    feats_bytes = n_pad * d_pad * 2
    inter_bytes = 8 * tile * max(n_pad, _LANES) * 4
    vmem_limit = int(min(max(2 * feats_bytes + inter_bytes + (8 << 20),
                             32 << 20), 100 << 20))

    kernel = functools.partial(_triplet_loss_kernel,
                               margin=float(margin), n_valid=N)

    partials = pl.pallas_call(
        kernel,
        out_shape=jax.ShapeDtypeStruct((grid, _SUBLANES, _LANES), jnp.float32),
        grid_spec=pltpu.PrefetchScalarGridSpec(
            num_scalar_prefetch=0,
            grid=(grid,),
            in_specs=[
                pl.BlockSpec((tile, 1), lambda i: (i, 0)),        # query labels
                pl.BlockSpec((tile, 1), lambda i: (i, 0)),        # query norms
                pl.BlockSpec((n_pad, d_pad), lambda i: (0, 0)),   # feats (resident)
                pl.BlockSpec((1, n_pad), lambda i: (0, 0)),       # labels (row)
                pl.BlockSpec((1, n_pad), lambda i: (0, 0)),       # norms (row)
            ],
            out_specs=pl.BlockSpec((1, _SUBLANES, _LANES),
                                   lambda i: (i, 0, 0)),
        ),
        compiler_params=pltpu.CompilerParams(
            dimension_semantics=("parallel",),
            vmem_limit_bytes=vmem_limit),
    )(labels_col, norms_col, feats_bf, labels_row, norms_row)

    # Finish the mean over the true batch size in the wrapper.
    return jnp.sum(partials[:, 0, 0]) / N


def _triplet_loss_ref(feats, labels, margin=0.3):
    """Plain-JAX (f32) reference mirroring the PyTorch module."""
    x = feats.astype(jnp.float32)
    sq = jnp.sum(x * x, axis=1, keepdims=True)
    dist2 = sq + sq.T - 2.0 * (x @ x.T)
    dist = jnp.sqrt(jnp.maximum(dist2, 1e-12))
    lab = labels.reshape(-1, 1)
    is_pos = (lab == lab.T).astype(jnp.float32)
    is_neg = 1.0 - is_pos
    dist_ap = jnp.max(dist * is_pos, axis=1)
    dist_an = jnp.min(dist * is_neg + is_pos * MAX_INF, axis=1)
    return jnp.mean(jnp.maximum(dist_ap - dist_an + margin, 0.0))


if __name__ == "__main__":
    key = jax.random.PRNGKey(0)
    kf, kl = jax.random.split(key)
    N, D = 8, 32                      # small batch of 8 features, dim 32
    feats = jax.random.normal(kf, (N, D), dtype=jnp.float32)
    labels = jax.random.randint(kl, (N,), 0, 4, dtype=jnp.int32)

    loss = triplet_loss_pallas(feats, labels, margin=0.3)
    loss = jax.block_until_ready(loss)

    ref = _triplet_loss_ref(feats, labels, margin=0.3)
    # bf16 gram operands introduce ~1e-3 relative error in pairwise distances,
    # so the tolerance is loosened accordingly.
    assert jnp.allclose(loss, ref, rtol=5e-2, atol=5e-2), (loss, ref)

    print("KERNEL_OK")
</pallas_src>

<mosaic_0001>
module attributes {stable_mosaic.version = 11 : i64} {
  func.func @_triplet_loss_kernel(%arg0: i32, %arg1: memref<16x1xi32, #tpu.memory_space<vmem>>, %arg2: memref<16x1xf32, #tpu.memory_space<vmem>>, %arg3: memref<16x128xbf16, #tpu.memory_space<vmem>>, %arg4: memref<1x16xi32, #tpu.memory_space<vmem>>, %arg5: memref<1x16xf32, #tpu.memory_space<vmem>>, %arg6: memref<1x8x128xf32, #tpu.memory_space<vmem>>) attributes {dimension_semantics = [#tpu.dimension_semantics<parallel>], iteration_bounds = array<i64: 1>, scalar_prefetch = 0 : i64, scratch_operands = 0 : i64, tpu.core_type = #tpu.core_type<tc>, window_params = [{transform_indices = @transform_0, window_bounds = array<i64: 16, 1>}, {transform_indices = @transform_1, window_bounds = array<i64: 16, 1>}, {pipeline_mode = #tpu.pipeline_mode<synchronous>, transform_indices = @transform_2, window_bounds = array<i64: 16, 128>}, {pipeline_mode = #tpu.pipeline_mode<synchronous>, transform_indices = @transform_3, window_bounds = array<i64: 1, 16>}, {pipeline_mode = #tpu.pipeline_mode<synchronous>, transform_indices = @transform_4, window_bounds = array<i64: 1, 16>}, {transform_indices = @transform_5, window_bounds = array<i64: 1, 8, 128>}]} {
    %c16_i32 = arith.constant 16 : i32
    %0 = arith.muli %arg0, %c16_i32 : i32
    %1 = tpu.assume_multiple %0, 16 : i32
    %2 = arith.index_cast %1 : i32 to index
    %c0 = arith.constant 0 : index
    %3 = vector.load %arg3[%2, %c0] : memref<16x128xbf16, #tpu.memory_space<vmem>>, vector<16x128xbf16>
    %c0_0 = arith.constant 0 : index
    %c0_1 = arith.constant 0 : index
    %4 = vector.load %arg3[%c0_0, %c0_1] : memref<16x128xbf16, #tpu.memory_space<vmem>>, vector<16x128xbf16>
    %cst = arith.constant dense<0.000000e+00> : vector<16x16xf32>
    %5 = tpu.matmul %3, %4, %cst {dimension_numbers = #tpu.dot_dimension_numbers<[1], [1], [0], [0], [0, 0, 1, 0], [], []>} : vector<16x128xbf16>, vector<16x128xbf16>, vector<16x16xf32> -> vector<16x16xf32>
    %c0_2 = arith.constant 0 : index
    %c0_3 = arith.constant 0 : index
    %6 = vector.load %arg5[%c0_2, %c0_3] : memref<1x16xf32, #tpu.memory_space<vmem>>, vector<1x16xf32>
    %cst_4 = arith.constant 2.000000e+00 : f32
    %7 = vector.broadcast %cst_4 : f32 to vector<16x16xf32>
    %8 = arith.mulf %7, %5 : vector<16x16xf32>
    %9 = vector.broadcast %6 : vector<1x16xf32> to vector<16x16xf32>
    %10 = arith.subf %9, %8 : vector<16x16xf32>
    %c0_5 = arith.constant 0 : index
    %c0_6 = arith.constant 0 : index
    %11 = vector.load %arg1[%c0_5, %c0_6] : memref<16x1xi32, #tpu.memory_space<vmem>>, vector<16x1xi32>
    %c0_7 = arith.constant 0 : index
    %c0_8 = arith.constant 0 : index
    %12 = vector.load %arg4[%c0_7, %c0_8] : memref<1x16xi32, #tpu.memory_space<vmem>>, vector<1x16xi32>
    %13 = vector.broadcast %11 : vector<16x1xi32> to vector<16x16xi32>
    %14 = vector.broadcast %12 : vector<1x16xi32> to vector<16x16xi32>
    %15 = arith.cmpi eq, %13, %14 : vector<16x16xi32>
    %16 = tpu.iota {dimensions = array<i32: 1>} : vector<1x16xi32>
    %c8_i32 = arith.constant 8 : i32
    %17 = vector.broadcast %c8_i32 : i32 to vector<1x16xi32>
    %18 = arith.cmpi slt, %16, %17 : vector<1x16xi32>
    %19 = vector.broadcast %18 : vector<1x16xi1> to vector<16x16xi1>
    %20 = arith.andi %15, %19 : vector<16x16xi1>
    %cst_9 = arith.constant dense<true> : vector<16x16xi1>
    %21 = arith.xori %15, %cst_9 : vector<16x16xi1>
    %22 = vector.broadcast %18 : vector<1x16xi1> to vector<16x16xi1>
    %23 = arith.andi %21, %22 : vector<16x16xi1>
    %cst_10 = arith.constant -1.000000e+30 : f32
    %24 = vector.broadcast %cst_10 : f32 to vector<16x16xf32>
    %25 = arith.select %20, %10, %24 : vector<16x16xi1>, vector<16x16xf32>
    %cst_11 = arith.constant dense<0xFF800000> : vector<16xf32>
    %26 = vector.multi_reduction <maximumf>, %25, %cst_11 [1] : vector<16x16xf32> to vector<16xf32>
    %27 = vector.shape_cast %26 : vector<16xf32> to vector<16x1xf32>
    %cst_12 = arith.constant 1.000000e+16 : f32
    %28 = vector.broadcast %cst_12 : f32 to vector<16x16xf32>
    %29 = arith.select %23, %10, %28 : vector<16x16xi1>, vector<16x16xf32>
    %cst_13 = arith.constant dense<0x7F800000> : vector<16xf32>
    %30 = vector.multi_reduction <minimumf>, %29, %cst_13 [1] : vector<16x16xf32> to vector<16xf32>
    %31 = vector.shape_cast %30 : vector<16xf32> to vector<16x1xf32>
    %c0_14 = arith.constant 0 : index
    %c0_15 = arith.constant 0 : index
    %32 = vector.load %arg2[%c0_14, %c0_15] : memref<16x1xf32, #tpu.memory_space<vmem>>, vector<16x1xf32>
    %33 = arith.addf %32, %27 : vector<16x1xf32>
    %cst_16 = arith.constant 9.99999996E-13 : f32
    %34 = vector.broadcast %cst_16 : f32 to vector<16x1xf32>
    %35 = arith.maximumf %33, %34 : vector<16x1xf32>
    %36 = math.sqrt %35 : vector<16x1xf32>
    %37 = arith.addf %32, %31 : vector<16x1xf32>
    %cst_17 = arith.constant 9.99999996E-13 : f32
    %38 = vector.broadcast %cst_17 : f32 to vector<16x1xf32>
    %39 = arith.maximumf %37, %38 : vector<16x1xf32>
    %40 = math.sqrt %39 : vector<16x1xf32>
    %41 = arith.subf %36, %40 : vector<16x1xf32>
    %cst_18 = arith.constant 3.000000e-01 : f32
    %42 = vector.broadcast %cst_18 : f32 to vector<16x1xf32>
    %43 = arith.addf %41, %42 : vector<16x1xf32>
    %cst_19 = arith.constant 0.000000e+00 : f32
    %44 = vector.broadcast %cst_19 : f32 to vector<16x1xf32>
    %45 = arith.maximumf %43, %44 : vector<16x1xf32>
    %46 = tpu.iota {dimensions = array<i32: 0>} : vector<16x1xi32>
    %47 = vector.broadcast %1 : i32 to vector<16x1xi32>
    %48 = arith.addi %47, %46 : vector<16x1xi32>
    %c8_i32_20 = arith.constant 8 : i32
    %49 = vector.broadcast %c8_i32_20 : i32 to vector<16x1xi32>
    %50 = arith.cmpi slt, %48, %49 : vector<16x1xi32>
    %cst_21 = arith.constant 0.000000e+00 : f32
    %51 = vector.broadcast %cst_21 : f32 to vector<16x1xf32>
    %52 = arith.select %50, %45, %51 : vector<16x1xi1>, vector<16x1xf32>
    %cst_22 = arith.constant dense<0.000000e+00> : vector<1xf32>
    %53 = vector.multi_reduction <add>, %52, %cst_22 [0] : vector<16x1xf32> to vector<1xf32>
    %54 = vector.shape_cast %53 : vector<1xf32> to vector<1x1xf32>
    %55 = vector.shape_cast %54 : vector<1x1xf32> to vector<1x1x1xf32>
    %56 = vector.shape_cast %55 : vector<1x1x1xf32> to vector<1x1x1xf32>
    %57 = vector.broadcast %56 : vector<1x1x1xf32> to vector<1x8x128xf32>
    %c0_23 = arith.constant 0 : index
    %c0_24 = arith.constant 0 : index
    %c0_25 = arith.constant 0 : index
    %58 = vector.load %arg6[%c0_23, %c0_24, %c0_25] : memref<1x8x128xf32, #tpu.memory_space<vmem>>, vector<1x8x128xf32>
    tpu.vector_store %arg6[%c0_23, %c0_24, %c0_25], %57 {strides = array<i32>} : memref<1x8x128xf32, #tpu.memory_space<vmem>>, vector<1x8x128xf32>,
    return
  }
  func.func @transform_0(%arg0: i32) -> (i32, i32) {
    %c0_i32 = arith.constant 0 : i32
    %c0_i32_0 = arith.constant 0 : i32
    return %arg0, %c0_i32 : i32, i32
  }
  func.func @transform_1(%arg0: i32) -> (i32, i32) {
    %c0_i32 = arith.constant 0 : i32
    %c0_i32_0 = arith.constant 0 : i32
    return %arg0, %c0_i32 : i32, i32
  }
  func.func @transform_2(%arg0: i32) -> (i32, i32) {
    %c0_i32 = arith.constant 0 : i32
    %c0_i32_0 = arith.constant 0 : i32
    %c0_i32_1 = arith.constant 0 : i32
    return %c0_i32, %c0_i32_0 : i32, i32
  }
  func.func @transform_3(%arg0: i32) -> (i32, i32) {
    %c0_i32 = arith.constant 0 : i32
    %c0_i32_0 = arith.constant 0 : i32
    %c0_i32_1 = arith.constant 0 : i32
    return %c0_i32, %c0_i32_0 : i32, i32
  }
  func.func @transform_4(%arg0: i32) -> (i32, i32) {
    %c0_i32 = arith.constant 0 : i32
    %c0_i32_0 = arith.constant 0 : i32
    %c0_i32_1 = arith.constant 0 : i32
    return %c0_i32, %c0_i32_0 : i32, i32
  }
  func.func @transform_5(%arg0: i32) -> (i32, i32, i32) {
    %c0_i32 = arith.constant 0 : i32
    %c0_i32_0 = arith.constant 0 : i32
    %c0_i32_1 = arith.constant 0 : i32
    return %arg0, %c0_i32, %c0_i32_0 : i32, i32, i32
  }
}

</mosaic_0001>

<bundles_post_ra>
// kernel: tpu_custom_call.1
= control target key start
LH: loop header
LB: loop body
LE: loop exit
PB: predicated region body
PF: predicated region fallthrough
CT: control target
= control target key end

     0   :  { %v273_v1 = vmov 0.0   ;;  %vm274_vm0 = vmmov 0   ;;  %s338_s0 = inlined_call_operand.vmem [shape: s32[16,1], index: 0, kind: input, shape index: {}]   ;;  %s339_s1 = inlined_call_operand.vmem [shape: f32[16,1], index: 1, kind: input, shape index: {}]   ;;  %s340_s2 = inlined_call_operand.vmem [shape: bf16[16,128], index: 2, kind: input, shape index: {}]   ;;  %s341_s3 = inlined_call_operand.vmem [shape: s32[1,16], index: 3, kind: input, shape index: {}]   ;;  %s342_s4 = inlined_call_operand.vmem [shape: f32[1,16], index: 4, kind: input, shape index: {}]   ;;  %s343_s5 = inlined_call_operand.hbm [shape: f32[1,8,128], index: 5, kind: output, shape index: {}]  }
   0x1   :  { %v243_v0 = vld [vmem:[%s340_s2] sm:$0xff]   ;;  %230 = vmatprep.subr.bf16.mxu0 %v273_v1  ;;  %232 = vmatprep.mubr.msk.bf16.mxu0 %vm274_vm0, %v273_v1 }
   0x2   :  { %231 = vmatpush3.bf16.xpose.msra.mxu0 %v243_v0  ;;  %v95_v2 = vld [vmem:[%s338_s0] sm:$0xff] }
   0x3   :  { %10 = vsyncpa [#allocation3], 0  ;;  %v275_v3 = vmov 0   ;;  %v244_v4 = vld [vmem:[%s340_s2] sm:$0xff]   ;;  %v110_v5 = vlaneseq  ;;  %vm276_vm3 = vmmov 1   ;;  %vm123_vm7 = vcmask 130048  }
   0x4   :  { %241 = vset.pattern.permute.xlu0 %v275_v3  ;;  %242 = vset.pattern.permute.xlu1 %v275_v3  ;;  %v227_v6 = vld [vmem:[%s341_s3] ss:$0 sm:$0xff]  ;;  %vm192_vm12 = vcmask 7168  }
   0x5   :  { %99 = vperm.xlu0 %241, %v95_v2   ;;  %v111_v8 = vand.u32 127, %v110_v5  ;;  %v226_v10 = vld [vmem:[%s342_s4] ss:$0 sm:$0xff] }
   0x6   :  { %v138_v20 = vld [vmem:[%s339_s1] sm:$0xff]  ;;  %s277_s1 = smov [#allocation2]  }
   0x7   :  { %vm112_vm2 = vcmp.lt.s32.totalorder %v111_v8, 8  ;;  %s214_s4 = sshll.u32 %s277_s1, 4  ;;  %s215_s4 = int_to_ptr.vmem [resolvable:$true] %s214_s4 }
   0x8   :  { %s249_s27 = scalar_lea.vmem %s215_s4, 128  ;;  %p254_p1 = scmp.lt.s32.totalorder %s215_s4, %s215_s4 }
   0x9   :  { %233 = vmatmul.mubr.bf16.vlgmr.msra.gmra.mrb[0].mxu0 %v244_v4  ;;  %p250_p0 = scmp.ne.s32.totalorder %s215_s4, %s249_s27  ;;  %p255_p2 = scmp.lt.s32.totalorder %s249_s27, %s249_s27 }
   0xb   :  { %p256_p3 = por %p255_p2, %p254_p1 }
   0xd   :  { %p257_p4 = pnand %p256_p3, %p250_p0 }
  0x84   :  { %v100_v7 = vpop.permute.xlu0 %99 }
  0x85   :  { %vm108_vm1 = vcmp.eq.s32.totalorder %v100_v7, %v227_v6 }
  0x86   :  { %vm117_vm4 = vmxor %vm108_vm1, %vm276_vm3 }
  0x87   :  { %vm115_vm5 = vmand %vm108_vm1, %vm112_vm2 }
  0x88   :  { %vm119_vm6 = vmand %vm117_vm4, %vm112_vm2 }
  0xdc   :  { %v77_v9 = vpop.f32.mrb[0].mxu0 }
  0xdd   :  { %v85_v11 = vmul.f32 2.0, %v77_v9  ;;  %v234_v12 = vpop.f32.mrb[1].mxu0 }
  0xde   :  { %v80_v13 = vpop.f32.mrb[2].mxu0 }
  0xdf   :  { %v93_v14 = vsub.f32 %v226_v10, %v85_v11  ;;  %v235_v15 = vpop.f32.mrb[3].mxu0 }
  0xe1   :  { %v130_v16 = vsel %vm119_vm6, %v93_v14, 1e+16  ;;  %v121_v17 = vsel %vm115_vm5, %v93_v14, -1e+30 }
  0xe2   :  { %v132_v18 = vsel %vm123_vm7, %v130_v16, inf  ;;  %v124_v19 = vsel %vm123_vm7, %v121_v17, -inf }
  0xe3   :  { %133 = vmin.xlane.f32.xlu1 %v132_v18  ;;  %125 = vmax.xlane.f32.xlu0 %v124_v19 }
 0x170   :  { %v134_v21 = vpop.xlane.xlu1 %133  ;;  %v126_v22 = vpop.xlane.xlu0 %125 }
 0x171   :  { %v158_v23 = vadd.f32 %v138_v20, %v134_v21  ;;  %v140_v24 = vadd.f32 %v138_v20, %v126_v22 }
 0x173   :  { %v160_v25 = vmax.f32 %v158_v23, 1e-12  ;;  %v142_v26 = vmax.f32 %v140_v24, 1e-12 }
 0x175   :  { %245 = vrsqrt.f32 %v160_v25  ;;  %vm164_vm8 = vcmp.eq.f32.partialorder %v160_v25, inf  ;;  %v167_v31 = vand.u32 2147483648, %v160_v25  ;;  %vm146_vm9 = vcmp.eq.f32.partialorder %v142_v26, inf }
 0x176   :  { %247 = vrsqrt.f32 %v142_v26  ;;  %v149_v32 = vand.u32 2147483648, %v142_v26  ;;  %vm166_vm10 = vcmp.eq.f32.partialorder %v160_v25, 0.0  ;;  %vm148_vm11 = vcmp.eq.f32.partialorder %v142_v26, 0.0 }
 0x17f   :  { %v246_v27 = vpop.eup %245 }
 0x180   :  { %v248_v28 = vpop.eup %247  ;;  %v163_v29 = vmul.f32 %v246_v27, %v160_v25 }
 0x181   :  { %v145_v30 = vmul.f32 %v248_v28, %v142_v26 }
 0x182   :  { %v165_v33 = vsel %vm164_vm8, %v160_v25, %v163_v29 }
 0x183   :  { %v147_v34 = vsel %vm146_vm9, %v142_v26, %v145_v30  ;;  %v168_v35 = vsel %vm166_vm10, %v167_v31, %v165_v33 }
 0x184   :  { %v150_v36 = vsel %vm148_vm11, %v149_v32, %v147_v34 }
 0x185   :  { %v176_v37 = vsub.f32 %v150_v36, %v168_v35 }
 0x187   :  { %v178_v38 = vadd.f32 0.3, %v176_v37 }
 0x189   :  { %v180_v39 = vmax.f32 %v178_v38, 0.0 }
 0x18b   :  { %v193_v40 = vsel %vm192_vm12, %v180_v39, 0.0 }
 0x18c   :  { %v196_v41 = vrot.slane %v193_v40, 4 }
 0x18e   :  { %v197_v42 = vadd.f32 %v196_v41, %v193_v40 }
 0x190   :  { %v198_v43 = vrot.slane %v197_v42, 2 }
 0x192   :  { %v199_v44 = vadd.f32 %v198_v43, %v197_v42 }
 0x194   :  { %v200_v45 = vrot.slane %v199_v44, 1 }
 0x196   :  { %v201_v46 = vadd.f32 %v200_v45, %v199_v44 }
 0x198   :  { %204 = vperm.xlu1 %242, %v201_v46  }
 0x217   :  { %v205_v47 = vpop.permute.xlu1 %204 }
 0x218   :  { %207 = vst [vmem:[#allocation2] sm:$0xff] %v205_v47 }
 0x219   :  { %260 = shalt.err (!%p257_p4)
}
 0x21a   :  { %s261_s30 = scalar_lea.hbm %s343_s5, 128 }
 0x21b   :  { %p262_p5 = scmp.ne.s32.totalorder %s343_s5, %s261_s30  ;;  %p265_p6 = scmp.lt.u32.totalorder %s261_s30, %s343_s5 }
 0x21d   :  { %p267_p7 = pnand %p265_p6, %p262_p5 }
 0x21f   :  { %270 = shalt.err (!%p267_p7)
}
 0x220   :  { %217 = dma.vmem_to_hbm [thread:$0]  %s215_s4, 128, %s343_s5, [#allocation3]  }
 0x221   :  { %271 = dma.done.wait [#allocation3], 128  }
 0x222   :  { %272 = vsyncadd [#allocation3], 4294967168 }
 0x223   :  { %221 = vsyncpa [#allocation3], 1 }

</bundles_post_ra>
